<compile_context>
chip_gen: v5e
topology: v5e:2x2
jax: 0.10.0
libtpu: 0.0.40
codegen_flags: <defaults>
</compile_context>

<pallas_src>
import jax
import jax.numpy as jnp
from jax.experimental import pallas as pl
from jax.experimental.pallas import tpu as pltpu


def _sigmoid(z):
    # Exact sigmoid as a single EUP op: sigmoid(z) = 0.5 * tanh(z/2) + 0.5.
    return 0.5 * jnp.tanh(0.5 * z) + 0.5


def mlp_kernel(w1_ref, b1_ref, w2_ref, b2_ref, x_ref, o_ref):
    """Feature-major MLP tile.

    w1_ref: [10, 2]   b1_ref: [10, 1]
    w2_ref: [2, 10]   b2_ref: [2, 1]
    x_ref:  [2, TB]   o_ref:  [2, TB]    (TB = batch columns per tile)
    """
    x = x_ref[...].astype(jnp.float32)                       # [2, TB]

    # Layer 1 on the MXU: [10, 2] @ [2, TB] -> [10, TB], f32 accumulate.
    h = jnp.dot(w1_ref[...], x, preferred_element_type=jnp.float32) + b1_ref[...]
    h = _sigmoid(h)

    # Layer 2 on the MXU: [2, 10] @ [10, TB] -> [2, TB], f32 accumulate.
    y = jnp.dot(w2_ref[...], h, preferred_element_type=jnp.float32) + b2_ref[...]
    y = _sigmoid(y)

    o_ref[...] = y.astype(o_ref.dtype)


def _forward_feature_major(x_fm, w1, b1, w2, b2, *, block_cols, io_dtype):
    """x_fm: [2, N] feature-major. Returns [2, N] in io_dtype."""
    n = x_fm.shape[1]
    n128 = int(pl.cdiv(max(n, 1), 128)) * 128          # round batch up to lane width

    # Batch tile: multiple of 128 lanes, capped by block_cols.
    tb = max(128, (min(block_cols, n128) // 128) * 128)
    # v7x megacore: keep at least 2 grid steps when there is enough data,
    # otherwise one TensorCore idles under "parallel" sharding.
    if n128 // tb < 2 and n128 >= 256:
        tb = int(pl.cdiv(n128 // 2, 128)) * 128
    n_pad = int(pl.cdiv(n128, tb)) * tb
    grid = (n_pad // tb,)

    x_fm = x_fm.astype(io_dtype)
    if n_pad != n:
        # Zero padding is harmless; padded columns are sliced off below.
        x_fm = jnp.pad(x_fm, ((0, 0), (0, n_pad - n)))

    w1 = w1.astype(jnp.float32)                  # [10, 2]
    b1 = b1.reshape(10, 1).astype(jnp.float32)   # [10, 1]
    w2 = w2.astype(jnp.float32)                  # [2, 10]
    b2 = b2.reshape(2, 1).astype(jnp.float32)    # [2, 1]

    const = lambda i: (0, 0)   # weights/biases resident across grid steps

    io_bytes = jnp.dtype(io_dtype).itemsize
    # (2, tb) blocks sublane-pad to (8, tb) in VMEM; x + out, double-buffered.
    vmem_need = 2 * 2 * 8 * tb * io_bytes
    vmem_limit = int(min(max(vmem_need + (4 << 20), 32 << 20), 64 << 20))

    cost = pl.CostEstimate(
        flops=2 * (2 * 10 + 10 * 2) * n_pad,
        transcendentals=12 * n_pad,                                  # 10+2 tanh per column
        bytes_accessed=2 * 2 * n_pad * io_bytes + (20 + 10 + 20 + 2) * 4,
    )

    out_fm = pl.pallas_call(
        mlp_kernel,
        out_shape=jax.ShapeDtypeStruct((2, n_pad), io_dtype),
        grid=grid,
        in_specs=[
            pl.BlockSpec((10, 2), const),             # w1 (resident)
            pl.BlockSpec((10, 1), const),             # b1 (resident)
            pl.BlockSpec((2, 10), const),             # w2 (resident)
            pl.BlockSpec((2, 1), const),              # b2 (resident)
            pl.BlockSpec((2, tb), lambda i: (0, i)),  # x tile (pipelined)
        ],
        out_specs=pl.BlockSpec((2, tb), lambda i: (0, i)),
        compiler_params=pltpu.CompilerParams(
            dimension_semantics=("parallel",),        # shard batch tiles across TCs (v7x)
            vmem_limit_bytes=vmem_limit,
        ),
        cost_estimate=cost,
    )(w1, b1, w2, b2, x_fm)

    return out_fm[:, :n]


def test_net_forward(x, w1, b1, w2, b2, *, block_cols=32768,
                     io_dtype=jnp.float32, feature_major_io=False):
    """Forward pass of Test_net.

    Default (PyTorch convention): x is [N, 2] batch-major, returns [N, 2].
    With feature_major_io=True: x is [2, N], returns [2, N] — no boundary
    transposes, so no extra HBM passes at large N.
    w1: [10, 2], b1: [10], w2: [2, 10], b2: [2]  (PyTorch nn.Linear layouts).
    """
    if feature_major_io:
        return _forward_feature_major(x, w1, b1, w2, b2,
                                      block_cols=block_cols, io_dtype=io_dtype)
    # Batch-major convenience path (costs one transpose pass each way at large N;
    # prefer feature_major_io=True for throughput-critical callers).
    out_fm = _forward_feature_major(jnp.transpose(x), w1, b1, w2, b2,
                                    block_cols=block_cols, io_dtype=io_dtype)
    return jnp.transpose(out_fm)


def init_params(key):
    """Deterministic parameter init matching nn.Linear shapes (PyTorch layout)."""
    k1, k2, k3, k4 = jax.random.split(key, 4)
    bound1 = 1.0 / jnp.sqrt(2.0)
    w1 = jax.random.uniform(k1, (10, 2), jnp.float32, -bound1, bound1)
    b1 = jax.random.uniform(k2, (10,), jnp.float32, -bound1, bound1)
    bound2 = 1.0 / jnp.sqrt(10.0)
    w2 = jax.random.uniform(k3, (2, 10), jnp.float32, -bound2, bound2)
    b2 = jax.random.uniform(k4, (2,), jnp.float32, -bound2, bound2)
    return w1, b1, w2, b2


if __name__ == "__main__":
    key = jax.random.PRNGKey(0)
    key_x, key_p = jax.random.split(key)

    N = 8  # small batch for the demo; kernel tiles/pipelines for large N
    x = jax.random.normal(key_x, (N, 2), jnp.float32)
    w1, b1, w2, b2 = init_params(key_p)

    # Pure-JAX reference of the same forward pass (PyTorch semantics).
    ref = jax.nn.sigmoid(jax.nn.sigmoid(x @ w1.T + b1) @ w2.T + b2)

    # Batch-major (PyTorch-convention) path.
    out = test_net_forward(x, w1, b1, w2, b2)
    out = jax.block_until_ready(out)
    assert out.shape == (N, 2)
    assert jnp.allclose(out, ref, atol=1e-4), "mismatch vs reference (batch-major path)"

    # Feature-major path (no boundary transposes) — same math.
    out_fm = test_net_forward(jnp.transpose(x), w1, b1, w2, b2, feature_major_io=True)
    out_fm = jax.block_until_ready(out_fm)
    assert out_fm.shape == (2, N)
    assert jnp.allclose(jnp.transpose(out_fm), ref, atol=1e-4), \
        "mismatch vs reference (feature-major path)"

    print("KERNEL_OK")
</pallas_src>

<mosaic_0001>
module attributes {stable_mosaic.version = 11 : i64} {
  func.func @mlp_kernel(%arg0: i32, %arg1: memref<10x2xf32, #tpu.memory_space<vmem>>, %arg2: memref<10x1xf32, #tpu.memory_space<vmem>>, %arg3: memref<2x10xf32, #tpu.memory_space<vmem>>, %arg4: memref<2x1xf32, #tpu.memory_space<vmem>>, %arg5: memref<2x128xf32, #tpu.memory_space<vmem>>, %arg6: memref<2x128xf32, #tpu.memory_space<vmem>>) attributes {dimension_semantics = [#tpu.dimension_semantics<parallel>], iteration_bounds = array<i64: 1>, scalar_prefetch = 0 : i64, scratch_operands = 0 : i64, tpu.core_type = #tpu.core_type<tc>, window_params = [{pipeline_mode = #tpu.pipeline_mode<synchronous>, transform_indices = @transform_0, window_bounds = array<i64: 10, 2>}, {pipeline_mode = #tpu.pipeline_mode<synchronous>, transform_indices = @transform_1, window_bounds = array<i64: 10, 1>}, {pipeline_mode = #tpu.pipeline_mode<synchronous>, transform_indices = @transform_2, window_bounds = array<i64: 2, 10>}, {pipeline_mode = #tpu.pipeline_mode<synchronous>, transform_indices = @transform_3, window_bounds = array<i64: 2, 1>}, {transform_indices = @transform_4, window_bounds = array<i64: 2, 128>}, {transform_indices = @transform_5, window_bounds = array<i64: 2, 128>}]} {
    %c0 = arith.constant 0 : index
    %c0_0 = arith.constant 0 : index
    %0 = vector.load %arg5[%c0, %c0_0] : memref<2x128xf32, #tpu.memory_space<vmem>>, vector<2x128xf32>
    %c0_1 = arith.constant 0 : index
    %c0_2 = arith.constant 0 : index
    %1 = vector.load %arg1[%c0_1, %c0_2] : memref<10x2xf32, #tpu.memory_space<vmem>>, vector<10x2xf32>
    %cst = arith.constant dense<0.000000e+00> : vector<10x128xf32>
    %2 = tpu.matmul %1, %0, %cst {dimension_numbers = #tpu.dot_dimension_numbers<[1], [0], [0], [1], [0, 0, 1, 1], [], []>} : vector<10x2xf32>, vector<2x128xf32>, vector<10x128xf32> -> vector<10x128xf32>
    %c0_3 = arith.constant 0 : index
    %c0_4 = arith.constant 0 : index
    %3 = vector.load %arg2[%c0_3, %c0_4] : memref<10x1xf32, #tpu.memory_space<vmem>>, vector<10x1xf32>
    %4 = vector.broadcast %3 : vector<10x1xf32> to vector<10x128xf32>
    %5 = arith.addf %2, %4 : vector<10x128xf32>
    %cst_5 = arith.constant 5.000000e-01 : f32
    %6 = vector.broadcast %cst_5 : f32 to vector<10x128xf32>
    %7 = arith.mulf %6, %5 : vector<10x128xf32>
    %8 = math.tanh %7 : vector<10x128xf32>
    %cst_6 = arith.constant 5.000000e-01 : f32
    %9 = vector.broadcast %cst_6 : f32 to vector<10x128xf32>
    %10 = arith.mulf %9, %8 : vector<10x128xf32>
    %cst_7 = arith.constant 5.000000e-01 : f32
    %11 = vector.broadcast %cst_7 : f32 to vector<10x128xf32>
    %12 = arith.addf %10, %11 : vector<10x128xf32>
    %c0_8 = arith.constant 0 : index
    %c0_9 = arith.constant 0 : index
    %13 = vector.load %arg3[%c0_8, %c0_9] : memref<2x10xf32, #tpu.memory_space<vmem>>, vector<2x10xf32>
    %cst_10 = arith.constant dense<0.000000e+00> : vector<2x128xf32>
    %14 = tpu.matmul %13, %12, %cst_10 {dimension_numbers = #tpu.dot_dimension_numbers<[1], [0], [0], [1], [0, 0, 1, 1], [], []>} : vector<2x10xf32>, vector<10x128xf32>, vector<2x128xf32> -> vector<2x128xf32>
    %c0_11 = arith.constant 0 : index
    %c0_12 = arith.constant 0 : index
    %15 = vector.load %arg4[%c0_11, %c0_12] : memref<2x1xf32, #tpu.memory_space<vmem>>, vector<2x1xf32>
    %16 = vector.broadcast %15 : vector<2x1xf32> to vector<2x128xf32>
    %17 = arith.addf %14, %16 : vector<2x128xf32>
    %cst_13 = arith.constant 5.000000e-01 : f32
    %18 = vector.broadcast %cst_13 : f32 to vector<2x128xf32>
    %19 = arith.mulf %18, %17 : vector<2x128xf32>
    %20 = math.tanh %19 : vector<2x128xf32>
    %cst_14 = arith.constant 5.000000e-01 : f32
    %21 = vector.broadcast %cst_14 : f32 to vector<2x128xf32>
    %22 = arith.mulf %21, %20 : vector<2x128xf32>
    %cst_15 = arith.constant 5.000000e-01 : f32
    %23 = vector.broadcast %cst_15 : f32 to vector<2x128xf32>
    %24 = arith.addf %22, %23 : vector<2x128xf32>
    %c0_16 = arith.constant 0 : index
    %c0_17 = arith.constant 0 : index
    %25 = vector.load %arg6[%c0_16, %c0_17] : memref<2x128xf32, #tpu.memory_space<vmem>>, vector<2x128xf32>
    tpu.vector_store %arg6[%c0_16, %c0_17], %24 {strides = array<i32>} : memref<2x128xf32, #tpu.memory_space<vmem>>, vector<2x128xf32>,
    return
  }
  func.func @transform_0(%arg0: i32) -> (i32, i32) {
    %c0_i32 = arith.constant 0 : i32
    %c0_i32_0 = arith.constant 0 : i32
    %c0_i32_1 = arith.constant 0 : i32
    return %c0_i32, %c0_i32_0 : i32, i32
  }
  func.func @transform_1(%arg0: i32) -> (i32, i32) {
    %c0_i32 = arith.constant 0 : i32
    %c0_i32_0 = arith.constant 0 : i32
    %c0_i32_1 = arith.constant 0 : i32
    return %c0_i32, %c0_i32_0 : i32, i32
  }
  func.func @transform_2(%arg0: i32) -> (i32, i32) {
    %c0_i32 = arith.constant 0 : i32
    %c0_i32_0 = arith.constant 0 : i32
    %c0_i32_1 = arith.constant 0 : i32
    return %c0_i32, %c0_i32_0 : i32, i32
  }
  func.func @transform_3(%arg0: i32) -> (i32, i32) {
    %c0_i32 = arith.constant 0 : i32
    %c0_i32_0 = arith.constant 0 : i32
    %c0_i32_1 = arith.constant 0 : i32
    return %c0_i32, %c0_i32_0 : i32, i32
  }
  func.func @transform_4(%arg0: i32) -> (i32, i32) {
    %c0_i32 = arith.constant 0 : i32
    %c0_i32_0 = arith.constant 0 : i32
    return %c0_i32, %arg0 : i32, i32
  }
  func.func @transform_5(%arg0: i32) -> (i32, i32) {
    %c0_i32 = arith.constant 0 : i32
    %c0_i32_0 = arith.constant 0 : i32
    return %c0_i32, %arg0 : i32, i32
  }
}

</mosaic_0001>

<bundles_post_ra>
// kernel: tpu_custom_call.1
= control target key start
LH: loop header
LB: loop body
LE: loop exit
PB: predicated region body
PF: predicated region fallthrough
CT: control target
= control target key end

     0   :  { %vm43_vm0 = vcmask 1041408   ;;  %vm36_vm1 = vcmask 15360   ;;  %s234_s0 = inlined_call_operand.vmem [shape: f32[10,2], index: 0, kind: input, shape index: {}]   ;;  %s235_s1 = inlined_call_operand.vmem [shape: f32[10,1], index: 1, kind: input, shape index: {}]   ;;  %s236_s2 = inlined_call_operand.vmem [shape: f32[2,10], index: 2, kind: input, shape index: {}]   ;;  %s237_s3 = inlined_call_operand.vmem [shape: f32[2,1], index: 3, kind: input, shape index: {}]   ;;  %s238_s4 = inlined_call_operand.vmem [shape: f32[2,128], index: 4, kind: input, shape index: {}]   ;;  %s239_s5 = inlined_call_operand.hbm [shape: f32[2,128], index: 5, kind: output, shape index: {}]  }
   0x1   :  { %v21_v0 = vld [vmem:[%s238_s4] sm:$0x3]  ;;  %v23_v2 = vld [vmem:[%s234_s0 + $0x8] sm:$0x3] }
   0x2   :  { %v22_v1 = vld [vmem:[%s234_s0] sm:$0xff]  ;;  %133 = vmatpush.msk.msra.mxu0 %vm43_vm0, %v21_v0  ;;  %138 = vmatpush.msk.msra.mxu2 %vm43_vm0, %v21_v0  ;;  %v25_v3 = vld [vmem:[%s235_s1 + $0x8] sm:$0x3] }
   0x3   :  { %134 = vmatmul.msk.f32.vlgmr.msra.gmra.mxu0 %vm36_vm1, %v22_v1  ;;  %135 = vmatmul.msk.f32.vlgmr.msra.gmra.mxu2 %vm36_vm1, %v23_v2 }
   0x4   :  { %10 = vsyncpa [#allocation3], 0  ;;  %v175_v4 = vmov 0   ;;  %v24_v5 = vld [vmem:[%s235_s1] sm:$0xff]  ;;  %vm85_vm2 = vcmask 80896   ;;  %s124_s7 = sshll.u32 %s239_s5, 4  ;;  %s125_s7 = int_to_ptr.hbm [resolvable:$true] %s124_s7 }
   0x5   :  { %141 = vset.pattern.permute.xlu0 %v175_v4  ;;  %142 = vset.pattern.permute.xlu1 %v175_v4  ;;  %v79_v7 = vld [vmem:[%s237_s3] sm:$0x3]  ;;  %s176_s3 = smov [#allocation2]  }
   0x6   :  { %33 = vperm.xlu0 %141, %v25_v3   ;;  %82 = vperm.xlu1 %142, %v79_v7   ;;  %v78_v21 = vld [vmem:[%s236_s2] sm:$0x3]  ;;  %s122_s29 = sshll.u32 %s176_s3, 4  ;;  %s123_s29 = int_to_ptr.vmem [resolvable:$true] %s122_s29 }
   0xe   :  { %28 = vperm.xlu0 %141, %v24_v5  }
  0x78   :  { %v34_v6 = vpop.permute.xlu0 %33  ;;  %v83_v22 = vpop.permute.xlu1 %82 }
  0x80   :  { %v29_v8 = vpop.permute.xlu0 %28  ;;  %v64_v9 = vpop.f32.mrf.mxu0 }
  0x81   :  { %v65_v10 = vadd.f32 %v64_v9, %v29_v8 }
  0x83   :  { %v70_v11 = vmul.f32 0.5, %v65_v10 }
  0x85   :  { %143 = vtanh.f32 %v70_v11 }
  0x86   :  { %v67_v12 = vpop.f32.mrf.mxu2 }
  0x87   :  { %v68_v13 = vadd.f32 %v67_v12, %v34_v6 }
  0x89   :  { %v71_v14 = vmul.f32 0.5, %v68_v13 }
  0x8b   :  { %145 = vtanh.f32 %v71_v14  ;;  %v144_v15 = vpop.eup %143 }
  0x8c   :  { %v74_v18 = vmul.f32 0.5, %v144_v15 }
  0x8e   :  { %v76_v20 = vadd.f32 0.5, %v74_v18 }
  0x91   :  { %v146_v16 = vpop.eup %145 }
  0x92   :  { %v75_v17 = vmul.f32 0.5, %v146_v16 }
  0x94   :  { %v77_v19 = vadd.f32 0.5, %v75_v17 }
  0x96   :  { %136 = vmatpush.msk.msra.mxu1 %vm43_vm0, %v77_v19 }
  0x98   :  { %107 = vmatpush.msra.mxu1 %v76_v20 }
  0x99   :  { %137 = vmatmul.msk.f32.vlgmr.msra.gmra.mxu1 %vm85_vm2, %v78_v21 }
 0x116   :  { %v109_v23 = vpop.f32.mrf.mxu1 }
 0x117   :  { %v110_v24 = vadd.f32 %v109_v23, %v83_v22 }
 0x119   :  { %v112_v25 = vmul.f32 0.5, %v110_v24 }
 0x11b   :  { %147 = vtanh.f32 %v112_v25 }
 0x121   :  { %v148_v26 = vpop.eup %147 }
 0x122   :  { %v114_v27 = vmul.f32 0.5, %v148_v26 }
 0x124   :  { %v115_v28 = vadd.f32 0.5, %v114_v27 }
 0x126   :  { %116 = vst [vmem:[#allocation2] sm:$0x3] %v115_v28 }
 0x127   :  { %127 = dma.vmem_to_hbm [thread:$0]  %s123_s29, 32, %s125_s7, [#allocation3]  }
 0x128   :  { %173 = dma.done.wait [#allocation3], 32  }
 0x129   :  { %174 = vsyncadd [#allocation3], 4294967264 }
 0x12a   :  { %132 = vsyncpa [#allocation3], 1 }

</bundles_post_ra>
